<compile_context>
chip_gen: v5e
topology: v5e:2x2
jax: 0.10.0
libtpu: 0.0.40
codegen_flags: <defaults>
</compile_context>

<pallas_src>
import math

import jax
import jax.numpy as jnp
import numpy as np
from jax.experimental import pallas as pl
from jax.experimental.pallas import tpu as pltpu


def _round_up(x: int, m: int) -> int:
    return ((x + m - 1) // m) * m


def _pos_emb_kernel(p_ref, tab_ref, exp_ref, out_ref):
    # p_ref  : (tile, B_pad) f32 -- frame index within its token; -1 => padding.
    # tab_ref: (2, N) f32        -- row 0: per-lane freq, row 1: phase (0 / pi/2).
    # exp_ref: (B_pad, N) f32    -- one-hot lane expansion (lane l <- batch l//dim).
    # out_ref: (tile, N)         -- one lane-dense time tile of the output.
    p_dense = jnp.dot(p_ref[...], exp_ref[...],
                      preferred_element_type=jnp.float32)       # (tile, N)
    angle = p_dense * tab_ref[0:1, :] + tab_ref[1:2, :]         # (tile, N)
    val = jnp.sin(angle)                                        # 1 EUP op/elem
    out_ref[...] = jnp.where(p_dense >= 0.0, val, 0.0).astype(out_ref.dtype)


def positional_embedding(durations, dim: int, denom: float = 10000.0,
                         max_length: int = 10000, tile_t: int = 512,
                         total_length=None, out_dtype=jnp.float32):
    """durations: (S_in, B) integer array.  Returns (T_out, B, dim)."""
    assert dim % 2 == 0, "dim must be even (sin/cos lane pairs)"
    s_in, batch = durations.shape
    n_flat = batch * dim

    # Per-batch inclusive cumsum of (clamped) durations.
    d_bt = jnp.minimum(jnp.transpose(durations).astype(jnp.int32), max_length)
    incl = jnp.cumsum(d_bt, axis=1)                              # (B, S_in)
    totals = incl[:, -1]                                         # (B,)

    # TODO(synk): T_out must be static under JAX; pass total_length= to avoid
    # this single blocking host readback when the caller already knows it.
    if total_length is None:
        t_out = int(jax.device_get(jnp.max(totals)))
    else:
        t_out = int(total_length)
    if t_out <= 0:
        return jnp.zeros((0, batch, dim), out_dtype)

    # ---- tile / VMEM budget (counts dbl-buffered output + f32 temporaries).
    itemsize = jnp.dtype(out_dtype).itemsize
    b_pad = _round_up(batch, 8)                      # sublane-aligned contraction
    const_bytes = 2 * (2 + b_pad) * n_flat * 4       # tab + expand, dbl-buffered
    per_row = n_flat * (2 * itemsize + 3 * 4) + 2 * b_pad * 4
    budget = max(1 << 20, (40 << 20) - const_bytes)
    vmem_rows = max(8, (budget // per_row) // 8 * 8)
    tile = max(8, min(tile_t, vmem_rows))
    if t_out >= 512:                 # enough work: >= 2 grid steps (v7x 2-TC)
        tile = min(tile, _round_up(pl.cdiv(t_out, 2), 8))
    tile = min(tile, _round_up(t_out, 8))
    num_tiles = pl.cdiv(t_out, tile)
    t_pad = num_tiles * tile

    # ---- per-frame within-token offsets, computed wrapper-side (tiny).
    t_idx = jnp.arange(t_pad, dtype=jnp.int32)                   # (T_pad,)
    tok = jax.vmap(
        lambda inc: jnp.searchsorted(inc, t_idx, side='right'))(incl)  # (B, T_pad)
    excl = jnp.concatenate(
        [jnp.zeros((batch, 1), jnp.int32), incl], axis=1)        # (B, S_in+1)
    start = jnp.take_along_axis(excl, tok.astype(jnp.int32), axis=1)   # (B, T_pad)
    p = t_idx[None, :] - start
    p = jnp.where(t_idx[None, :] < totals[:, None], p, -1)       # -1 => padding
    p = jnp.transpose(p).astype(jnp.float32)                     # (T_pad, B)
    if b_pad != batch:
        p = jnp.pad(p, ((0, 0), (0, b_pad - batch)), constant_values=-1.0)

    # ---- constants: per-lane freq/phase and the one-hot lane expansion.
    div = np.exp(np.arange(0, dim, 2, dtype=np.float32)
                 * (-math.log(denom) / dim))                     # (dim/2,)
    freq_flat = np.tile(np.repeat(div, 2), batch)                # (N,)
    phase_flat = np.tile(
        np.tile(np.array([0.0, math.pi / 2], np.float32), dim // 2), batch)
    tab = jnp.asarray(np.stack([freq_flat, phase_flat]).astype(np.float32))
    expand_np = np.zeros((b_pad, n_flat), np.float32)
    for b in range(batch):
        expand_np[b, b * dim:(b + 1) * dim] = 1.0
    expand = jnp.asarray(expand_np)

    out = pl.pallas_call(
        _pos_emb_kernel,
        out_shape=jax.ShapeDtypeStruct((t_out, n_flat), out_dtype),
        grid=(num_tiles,),
        in_specs=[
            pl.BlockSpec((tile, b_pad), lambda ti: (ti, 0)),
            pl.BlockSpec((2, n_flat), lambda ti: (0, 0)),
            pl.BlockSpec((b_pad, n_flat), lambda ti: (0, 0)),
        ],
        out_specs=pl.BlockSpec((tile, n_flat), lambda ti: (ti, 0)),
        compiler_params=pltpu.CompilerParams(
            dimension_semantics=("parallel",),
            vmem_limit_bytes=48 << 20),
    )(p, tab, expand)

    # (T_out, B*dim) -> (T_out, B, dim): trailing-dim split, no data movement.
    return out.reshape(t_out, batch, dim)


if __name__ == "__main__":
    dim, denom, max_length = 32, 10000.0, 64
    s_in, batch = 8, 2

    key = jax.random.PRNGKey(0)
    durations = jax.random.randint(key, (s_in, batch), 1, 6, dtype=jnp.int32)

    emb = positional_embedding(durations, dim, denom=denom,
                               max_length=max_length)
    emb = jax.block_until_ready(emb)

    # Pure numpy reference mirroring the PyTorch forward exactly.
    d_np = np.asarray(jax.device_get(durations))
    pos = np.arange(max_length, dtype=np.float32)[:, None]
    div_np = np.exp(np.arange(0, dim, 2, dtype=np.float32)
                    * (-math.log(denom) / dim))
    enc_np = np.zeros((max_length, dim), np.float32)
    enc_np[:, 0::2] = np.sin(pos * div_np)
    enc_np[:, 1::2] = np.cos(pos * div_np)
    seqs = []
    for b in range(batch):
        rows = [enc_np[: int(d), :] for d in d_np[:, b]]
        seqs.append(np.concatenate(rows, axis=0))
    t_out = max(s.shape[0] for s in seqs)
    ref = np.zeros((t_out, batch, dim), np.float32)
    for b, s in enumerate(seqs):
        ref[: s.shape[0], b, :] = s

    assert emb.shape == ref.shape, (emb.shape, ref.shape)
    np.testing.assert_allclose(np.asarray(emb), ref, rtol=1e-5, atol=1e-5)
    print("KERNEL_OK")
</pallas_src>

<mosaic_0001>
module attributes {stable_mosaic.version = 11 : i64} {
  func.func @_pos_emb_kernel(%arg0: i32, %arg1: memref<32x8xf32, #tpu.memory_space<vmem>>, %arg2: memref<2x64xf32, #tpu.memory_space<vmem>>, %arg3: memref<8x64xf32, #tpu.memory_space<vmem>>, %arg4: memref<32x64xf32, #tpu.memory_space<vmem>>) attributes {dimension_semantics = [#tpu.dimension_semantics<parallel>], iteration_bounds = array<i64: 1>, scalar_prefetch = 0 : i64, scratch_operands = 0 : i64, tpu.core_type = #tpu.core_type<tc>, window_params = [{transform_indices = @transform_0, window_bounds = array<i64: 32, 8>}, {pipeline_mode = #tpu.pipeline_mode<synchronous>, transform_indices = @transform_1, window_bounds = array<i64: 2, 64>}, {pipeline_mode = #tpu.pipeline_mode<synchronous>, transform_indices = @transform_2, window_bounds = array<i64: 8, 64>}, {transform_indices = @transform_3, window_bounds = array<i64: 32, 64>}]} {
    %c0 = arith.constant 0 : index
    %c0_0 = arith.constant 0 : index
    %0 = vector.load %arg1[%c0, %c0_0] : memref<32x8xf32, #tpu.memory_space<vmem>>, vector<32x8xf32>
    %c0_1 = arith.constant 0 : index
    %c0_2 = arith.constant 0 : index
    %1 = vector.load %arg3[%c0_1, %c0_2] : memref<8x64xf32, #tpu.memory_space<vmem>>, vector<8x64xf32>
    %cst = arith.constant dense<0.000000e+00> : vector<32x64xf32>
    %2 = tpu.matmul %0, %1, %cst {dimension_numbers = #tpu.dot_dimension_numbers<[1], [0], [0], [1], [0, 0, 1, 1], [], []>} : vector<32x8xf32>, vector<8x64xf32>, vector<32x64xf32> -> vector<32x64xf32>
    %c0_3 = arith.constant 0 : index
    %c0_4 = arith.constant 0 : index
    %3 = vector.load %arg2[%c0_3, %c0_4] : memref<2x64xf32, #tpu.memory_space<vmem>>, vector<1x64xf32>
    %4 = vector.broadcast %3 : vector<1x64xf32> to vector<32x64xf32>
    %5 = arith.mulf %2, %4 : vector<32x64xf32>
    %c1 = arith.constant 1 : index
    %c0_5 = arith.constant 0 : index
    %6 = vector.load %arg2[%c1, %c0_5] : memref<2x64xf32, #tpu.memory_space<vmem>>, vector<1x64xf32>
    %7 = vector.broadcast %6 : vector<1x64xf32> to vector<32x64xf32>
    %8 = arith.addf %5, %7 : vector<32x64xf32>
    %9 = math.sin %8 : vector<32x64xf32>
    %cst_6 = arith.constant 0.000000e+00 : f32
    %10 = vector.broadcast %cst_6 : f32 to vector<32x64xf32>
    %11 = arith.cmpf oge, %2, %10 : vector<32x64xf32>
    %cst_7 = arith.constant 0.000000e+00 : f32
    %12 = vector.broadcast %cst_7 : f32 to vector<32x64xf32>
    %13 = arith.select %11, %9, %12 : vector<32x64xi1>, vector<32x64xf32>
    %c0_8 = arith.constant 0 : index
    %c0_9 = arith.constant 0 : index
    %14 = vector.load %arg4[%c0_8, %c0_9] : memref<32x64xf32, #tpu.memory_space<vmem>>, vector<32x64xf32>
    tpu.vector_store %arg4[%c0_8, %c0_9], %13 {strides = array<i32>} : memref<32x64xf32, #tpu.memory_space<vmem>>, vector<32x64xf32>,
    return
  }
  func.func @transform_0(%arg0: i32) -> (i32, i32) {
    %c0_i32 = arith.constant 0 : i32
    %c0_i32_0 = arith.constant 0 : i32
    return %arg0, %c0_i32 : i32, i32
  }
  func.func @transform_1(%arg0: i32) -> (i32, i32) {
    %c0_i32 = arith.constant 0 : i32
    %c0_i32_0 = arith.constant 0 : i32
    %c0_i32_1 = arith.constant 0 : i32
    return %c0_i32, %c0_i32_0 : i32, i32
  }
  func.func @transform_2(%arg0: i32) -> (i32, i32) {
    %c0_i32 = arith.constant 0 : i32
    %c0_i32_0 = arith.constant 0 : i32
    %c0_i32_1 = arith.constant 0 : i32
    return %c0_i32, %c0_i32_0 : i32, i32
  }
  func.func @transform_3(%arg0: i32) -> (i32, i32) {
    %c0_i32 = arith.constant 0 : i32
    %c0_i32_0 = arith.constant 0 : i32
    return %arg0, %c0_i32 : i32, i32
  }
}

</mosaic_0001>

<bundles_post_ra>
// kernel: tpu_custom_call.1
= control target key start
LH: loop header
LB: loop body
LE: loop exit
PB: predicated region body
PF: predicated region fallthrough
CT: control target
= control target key end

     0   :  { %vm20_vm0 = vcmask 64512   ;;  %s1299_s0 = inlined_call_operand.vmem [shape: f32[32,8], index: 0, kind: input, shape index: {}]   ;;  %s1300_s1 = inlined_call_operand.vmem [shape: f32[2,64], index: 1, kind: input, shape index: {}]   ;;  %s1301_s2 = inlined_call_operand.vmem [shape: f32[8,64], index: 2, kind: input, shape index: {}]   ;;  %s1302_s3 = inlined_call_operand.hbm [shape: f32[27,64], index: 3, kind: output, shape index: {}]  }
   0x1   :  { %v19_v0 = vld [vmem:[%s1301_s2] sm:$0xff]  ;;  %v16_v2 = vld [vmem:[%s1299_s0 + $0x8] sm:$0xff]  ;;  %v17_v3 = vld [vmem:[%s1299_s0 + $0x10] sm:$0xff] }
   0x2   :  { %v15_v1 = vld [vmem:[%s1299_s0] sm:$0xff]  ;;  %48 = vmatpush.msra.mxu0 %v19_v0  ;;  %741 = vmatpush.msra.mxu1 %v19_v0  ;;  %v18_v4 = vld [vmem:[%s1299_s0 + $0x18] sm:$0xff] }
   0x3   :  { %742 = vmatpush.msra.mxu2 %v19_v0  ;;  %743 = vmatpush.msra.mxu3 %v19_v0 }
   0x4   :  { %8 = vsyncpa [#allocation3], 0  ;;  %725 = vmatmul.msk.f32.vlgmr.msra.gmra.mxu0 %vm20_vm0, %v15_v1  ;;  %726 = vmatmul.msk.f32.vlgmr.msra.gmra.mxu1 %vm20_vm0, %v16_v2  ;;  %v830_v5 = vld [vmem:[%s1300_s1] ss:$0 sm:$0xff]  ;;  %v835_v6 = vld [vmem:[%s1300_s1 + $0x1] ss:$0 sm:$0xff] }
   0x5   :  { %727 = vmatmul.msk.f32.vlgmr.msra.gmra.mxu2 %vm20_vm0, %v17_v3  ;;  %728 = vmatmul.msk.f32.vlgmr.msra.gmra.mxu3 %vm20_vm0, %v18_v4  ;;  %v782_v37 = vmov 683565275   ;;  %v783_v39 = vmov 2475754826   ;;  %v784_v41 = vmov 2131351028  }
   0x6   :  { %v785_v43 = vmov 2102212464   ;;  %v786_v45 = vmov 920167782   ;;  %v787_v54 = vmov 1326507024  }
   0x7   :  { %s789_s0 = smov [#allocation2]   ;;  %s713_s27 = sshll.u32 %s1302_s3, 4  ;;  %s714_s27 = int_to_ptr.hbm [resolvable:$true] %s713_s27 }
   0x8   :  { %s711_s1 = sshll.u32 %s789_s0, 4  ;;  %s790_s28 = smov 128   ;;  %s712_s1 = int_to_ptr.vmem [resolvable:$true] %s711_s1 }
   0x9   :  { %s791_s29 = smov 8  }
  0x81   :  { %v837_v7 = vpop.f32.mrf.mxu0  ;;  %v839_v8 = vpop.f32.mrf.mxu1 }
  0x82   :  { %v64_v9 = vmul.f32 %v830_v5, %v837_v7  ;;  %v65_v10 = vmul.f32 %v830_v5, %v839_v8 }
  0x84   :  { %v846_v11 = vadd.f32 %v835_v6, %v64_v9  ;;  %v849_v12 = vadd.f32 %v835_v6, %v65_v10 }
  0x86   :  { %v74_v13 = vand.u32 2147483647, %v846_v11  ;;  %v77_v14 = vand.u32 2139095040, %v846_v11  ;;  %v229_v15 = vand.u32 2147483647, %v849_v12  ;;  %v232_v16 = vand.u32 2139095040, %v849_v12 }
  0x88   :  { %v78_v17 = vshrl.u32 %v77_v14, 23  ;;  %v81_v18 = vand.u32 8388607, %v74_v13  ;;  %v233_v19 = vshrl.u32 %v232_v16, 23  ;;  %v857_v21 = vpop.f32.mrf.mxu2  ;;  %v236_v24 = vand.u32 8388607, %v229_v15 }
  0x89   :  { %v66_v27 = vmul.f32 %v830_v5, %v857_v21 }
  0x8a   :  { %v729_v20 = vadd.s32 4294967169, %v78_v17  ;;  %v82_v22 = vor.u32 8388608, %v81_v18  ;;  %v732_v23 = vadd.s32 4294967169, %v233_v19  ;;  %v237_v30 = vor.u32 8388608, %v236_v24 }
  0x8b   :  { %v870_v35 = vadd.f32 %v835_v6, %v66_v27 }
  0x8c   :  { %v84_v25 = vadd.s32 1, %v729_v20  ;;  %v239_v26 = vadd.s32 1, %v732_v23  ;;  %v863_v29 = vshll.u32 %v82_v22, 8  ;;  %v878_v48 = vshll.u32 %v237_v30, 8 }
  0x8d   :  { %v387_v62 = vand.u32 2139095040, %v870_v35 }
  0x8e   :  { %vm85_vm1 = vcmp.gt.s32.totalorder %v84_v25, 0  ;;  %vm240_vm2 = vcmp.gt.s32.totalorder %v239_v26, 0  ;;  %v123_v47 = vand.u32 65535, %v863_v29  ;;  %v124_v52 = vshrl.u32 %v863_v29, 16 }
  0x8f   :  { %v86_v28 = vsel %vm85_vm1, %v84_v25, 0  ;;  %v241_v32 = vsel %vm240_vm2, %v239_v26, 0  ;;  %v922_v22 = vand.u32 65535, %v878_v48 }
  0x90   :  { %v88_v31 = vand.u32 31, %v86_v28  ;;  %v865_v33 = vshrl.u32 %v86_v28, 5  ;;  %v867_v34 = vand.u32 31, %v241_v32  ;;  %v928_v30 = vshrl.u32 %v241_v32, 5 }
  0x92   :  { %v89_v36 = vsub.s32 32, %v88_v31  ;;  %v91_v38 = vshll.u32 %v782_v37, %v88_v31  ;;  %v94_v40 = vshll.u32 %v783_v39, %v88_v31  ;;  %v97_v42 = vshll.u32 %v784_v41, %v88_v31 }
  0x93   :  { %v100_v44 = vshll.u32 %v785_v43, %v88_v31  ;;  %v103_v46 = vshll.u32 %v786_v45, %v88_v31  ;;  %vm106_vm3 = vcmp.lt.s32.totalorder %v865_v33, 1  ;;  %vm109_vm4 = vcmp.lt.s32.totalorder %v865_v33, 4 }
  0x94   :  { %v92_v49 = vshrl.u32 %v783_v39, %v89_v36  ;;  %v95_v50 = vshrl.u32 %v784_v41, %v89_v36  ;;  %v98_v51 = vshrl.u32 %v785_v43, %v89_v36  ;;  %v101_v53 = vshrl.u32 %v786_v45, %v89_v36 }
  0x95   :  { %v104_v55 = vshrl.u32 %v787_v54, %v89_v36  ;;  %v889_v59 = vsub.s32 32, %v867_v34  ;;  %vm108_vm5 = vcmp.lt.s32.totalorder %v865_v33, 3  ;;  %v90_v63 = vshrl.u32 %v782_v37, %v89_v36 }
  0x96   :  { %v93_v56 = vor.u32 %v92_v49, %v91_v38  ;;  %v96_v57 = vor.u32 %v95_v50, %v94_v40  ;;  %v99_v58 = vor.u32 %v98_v51, %v97_v42  ;;  %v102_v60 = vor.u32 %v101_v53, %v100_v44 }
  0x97   :  { %v105_v61 = vor.u32 %v104_v55, %v103_v46  ;;  %vm107_vm6 = vcmp.lt.s32.totalorder %v865_v33, 2  ;;  %v246_v4 = vshll.u32 %v782_v37, %v867_v34  ;;  %v249_v9 = vshll.u32 %v783_v39, %v867_v34 }
  0x98   :  { %v114_v0 = vsel %vm106_vm3, %v93_v56, %v96_v57  ;;  %v118_v1 = vsel %vm106_vm3, %v96_v57, %v99_v58  ;;  %v115_v2 = vsel %vm109_vm4, %v102_v60, 920167782  ;;  %v111_v10 = vsel %vm109_vm4, %v99_v58, 2102212464 }
  0x99   :  { %v119_v3 = vsel %vm109_vm4, %v105_v61, 1326507024  ;;  %v116_v14 = vsel %vm108_vm5, %v99_v58, %v115_v2  ;;  %v247_v17 = vshrl.u32 %v783_v39, %v889_v59  ;;  %v250_v20 = vshrl.u32 %v784_v41, %v889_v59 }
  0x9a   :  { %v120_v16 = vsel %vm108_vm5, %v102_v60, %v119_v3  ;;  %v117_v18 = vsel %vm107_vm6, %v114_v0, %v116_v14  ;;  %v110_v27 = vsel %vm106_vm3, %v90_v63, %v93_v56  ;;  %v112_v28 = vsel %vm108_vm5, %v96_v57, %v111_v10 }
  0x9b   :  { %v121_v19 = vsel %vm107_vm6, %v118_v1, %v120_v16  ;;  %v147_v25 = vand.u32 65535, %v117_v18  ;;  %v148_v26 = vshrl.u32 %v117_v18, 16  ;;  %v930_v31 = vor.u32 %v247_v17, %v246_v4 }
  0x9c   :  { %v125_v23 = vand.u32 65535, %v121_v19  ;;  %v126_v24 = vshrl.u32 %v121_v19, 16  ;;  %v932_v40 = vor.u32 %v250_v20, %v249_v9  ;;  %v252_v42 = vshll.u32 %v784_v41, %v867_v34 }
  0x9d   :  { %v150_v46 = vmul.u32 %v148_v26, %v123_v47  ;;  %v151_v49 = vmul.u32 %v147_v25, %v124_v52  ;;  %v253_v50 = vshrl.u32 %v785_v43, %v889_v59  ;;  %v149_v55 = vmul.u32 %v147_v25, %v123_v47 }
  0x9e   :  { %v128_v36 = vmul.u32 %v126_v24, %v123_v47  ;;  %v129_v38 = vmul.u32 %v125_v23, %v124_v52  ;;  %v127_v44 = vmul.u32 %v125_v23, %v123_v47  ;;  %v130_v51 = vmul.u32 %v126_v24, %v124_v52 }
  0x9f   :  { %v152_v32 = vmul.u32 %v148_v26, %v124_v52  ;;  %v153_v60 = vshll.u32 %v150_v46, 16  ;;  %v155_v63 = vshll.u32 %v151_v49, 16  ;;  %v255_v0 = vshll.u32 %v785_v43, %v867_v34 }
  0xa0   :  { %v131_v53 = vshll.u32 %v128_v36, 16  ;;  %v132_v56 = vshrl.u32 %v128_v36, 16  ;;  %v133_v57 = vshll.u32 %v129_v38, 16  ;;  %v134_v58 = vshrl.u32 %v129_v38, 16 }
  0xa1   :  { %v788_v1 = vmov 0   ;;  %vm157_vm8 = vc.u32 %v149_v55, %v153_v60  ;;  %v159_v3 = vadd.s32 %v153_v60, %v149_v55  ;;  %v256_v4 = vshrl.u32 %v786_v45, %v889_v59 }
  0xa2   :  { %vm135_vm7 = vc.u32 %v127_v44, %v131_v53  ;;  %v137_v61 = vadd.s32 %v131_v53, %v127_v44  ;;  %v158_v52 = vsel %vm157_vm8, 1, %v788_v1  ;;  %v258_v9 = vshll.u32 %v786_v45, %v867_v34 }
  0xa3   :  { %v136_v2 = vsel %vm135_vm7, 1, %v788_v1  ;;  %v160_v14 = vadd.s32 %v158_v52, %v152_v32  ;;  %vm161_vm10 = vc.u32 %v159_v3, %v155_v63  ;;  %v947_v16 = vor.u32 %v253_v50, %v252_v42 }
  0xa4   :  { %v138_v47 = vadd.s32 %v136_v2, %v130_v51  ;;  %vm139_vm9 = vc.u32 %v137_v61, %v133_v57  ;;  %v162_v18 = vsel %vm161_vm10, 1, %v788_v1  ;;  %v257_v19 = vor.u32 %v256_v4, %v255_v0 }
  0xa5   :  { %v140_v10 = vsel %vm139_vm9, 1, %v788_v1  ;;  %v259_v20 = vshrl.u32 %v787_v54, %v889_v59  ;;  %v154_v23 = vshrl.u32 %v150_v46, 16  ;;  %v164_v24 = vadd.s32 %v162_v18, %v160_v14 }
  0xa6   :  { %v142_v17 = vadd.s32 %v140_v10, %v138_v47  ;;  %vm261_vm11 = vcmp.lt.s32.totalorder %v928_v30, 1  ;;  %vm263_vm12 = vcmp.lt.s32.totalorder %v928_v30, 3  ;;  %v156_v25 = vshrl.u32 %v151_v49, 16 }
  0xa7   :  { %v260_v26 = vor.u32 %v259_v20, %v258_v9  ;;  %vm264_vm13 = vcmp.lt.s32.totalorder %v928_v30, 4  ;;  %v955_v36 = vadd.s32 %v159_v3, %v155_v63  ;;  %v165_v38 = vadd.s32 %v164_v24, %v154_v23 }
  0xa8   :  { %v143_v34 = vadd.s32 %v142_v17, %v132_v56  ;;  %v269_v42 = vsel %vm261_vm11, %v930_v31, %v932_v40  ;;  %v270_v44 = vsel %vm264_vm13, %v257_v19, 920167782  ;;  %vm262_vm14 = vcmp.lt.s32.totalorder %v928_v30, 2 }
  0xa9   :  { %v271_v49 = vsel %vm263_vm12, %v947_v16, %v270_v44  ;;  %v273_v50 = vsel %vm261_vm11, %v932_v40, %v947_v16  ;;  %v113_v51 = vsel %vm107_vm6, %v110_v27, %v112_v28  ;;  %v166_v53 = vadd.s32 %v165_v38, %v156_v25 }
  0xaa   :  { %v963_v46 = vadd.s32 %v143_v34, %v134_v58  ;;  %v272_v55 = vsel %vm262_vm14, %v269_v42, %v271_v49  ;;  %v274_v32 = vsel %vm264_vm13, %v260_v26, 1326507024  ;;  %v279_v57 = vshrl.u32 %v878_v48, 16 }
  0xab   :  { %v275_v56 = vsel %vm263_vm12, %v257_v19, %v274_v32  ;;  %v302_v58 = vand.u32 65535, %v272_v55  ;;  %v170_v60 = vadd.s32 1, %v166_v53  ;;  %v303_v27 = vshrl.u32 %v272_v55, 16 }
  0xac   :  { %vm169_vm15 = vc.u32 %v963_v46, %v955_v36  ;;  %v276_v33 = vsel %vm262_vm14, %v273_v50, %v275_v56  ;;  %v388_v28 = vshrl.u32 %v387_v62, 23  ;;  %v167_v61 = vmul.u32 %v863_v29, %v113_v51 }
  0xad   :  { %v280_v63 = vand.u32 65535, %v276_v33  ;;  %v281_v0 = vshrl.u32 %v276_v33, 16  ;;  %v171_v2 = vsel %vm169_vm15, %v170_v60, %v166_v53  ;;  %v305_v3 = vmul.u32 %v303_v27, %v922_v22 }
  0xae   :  { %v306_v4 = vmul.u32 %v302_v58, %v279_v57  ;;  %v172_v47 = vadd.s32 %v171_v2, %v167_v61  ;;  %v245_v52 = vshrl.u32 %v782_v37, %v889_v59  ;;  %v304_v14 = vmul.u32 %v302_v58, %v922_v22 }
  0xaf   :  { %v283_v9 = vmul.u32 %v281_v0, %v922_v22  ;;  %v284_v10 = vmul.u32 %v280_v63, %v279_v57  ;;  %v307_v17 = vmul.u32 %v303_v27, %v279_v57  ;;  %v308_v18 = vshll.u32 %v305_v3, 16 }
  0xb0   :  { %v735_v62 = vadd.s32 4294967169, %v388_v28  ;;  %v173_v19 = vadd.s32 536870912, %v172_v47  ;;  %v282_v29 = vmul.u32 %v280_v63, %v922_v22  ;;  %v285_v20 = vmul.u32 %v281_v0, %v279_v57 }
  0xb1   :  { %v286_v23 = vshll.u32 %v283_v9, 16  ;;  %v288_v24 = vshll.u32 %v284_v10, 16  ;;  %v310_v34 = vshll.u32 %v306_v4, 16  ;;  %vm312_vm0 = vc.u32 %v304_v14, %v308_v18 }
  0xb2   :  { %v314_v25 = vadd.s32 %v308_v18, %v304_v14  ;;  %v174_v26 = vshrl.u32 %v173_v19, 30  ;;  %v313_v38 = vsel %vm312_vm0, 1, %v788_v1  ;;  %v384_v49 = vand.u32 2147483647, %v870_v35 }
  0xb3   :  { %vm290_vm1 = vc.u32 %v282_v29, %v286_v23  ;;  %v292_v59 = vadd.s32 %v286_v23, %v282_v29  ;;  %v315_v44 = vadd.s32 %v313_v38, %v307_v17  ;;  %v266_v22 = vsel %vm264_vm13, %v947_v16, 2102212464 }
  0xb4   :  { %v291_v42 = vsel %vm290_vm1, 1, %v788_v1  ;;  %vm316_vm2 = vc.u32 %v314_v25, %v310_v34  ;;  %v175_v50 = vshll.u32 %v174_v26, 30  ;;  %v265_v53 = vsel %vm261_vm11, %v245_v52, %v930_v31 }
  0xb5   :  { %v293_v51 = vadd.s32 %v291_v42, %v285_v20  ;;  %vm294_vm3 = vc.u32 %v292_v59, %v288_v24  ;;  %v317_v32 = vsel %vm316_vm2, 1, %v788_v1  ;;  %v394_v56 = vadd.s32 1, %v735_v62 }
  0xb6   :  { %v295_v55 = vsel %vm294_vm3, 1, %v788_v1  ;;  %v176_v57 = vsub.s32 %v172_v47, %v175_v50  ;;  %v287_v58 = vshrl.u32 %v283_v9, 16  ;;  %v319_v33 = vadd.s32 %v317_v32, %v315_v44 }
  0xb7   :  { %v297_v60 = vadd.s32 %v295_v55, %v293_v51  ;;  %v267_v27 = vsel %vm263_vm12, %v932_v40, %v266_v22  ;;  %v289_v16 = vshrl.u32 %v284_v10, 16  ;;  %v309_v28 = vshrl.u32 %v305_v3, 16 }
  0xb8   :  { %vm395_vm4 = vcmp.gt.s32.totalorder %v394_v56, 0  ;;  %vm177_vm5 = vcmp.lt.s32.totalorder %v176_v57, 0  ;;  %v178_v61 = vsub.s32 0, %v176_v57  ;;  %v198_v63 = vsub.s32 4, %v174_v26 }
  0xb9   :  { %v298_v31 = vadd.s32 %v297_v60, %v287_v58  ;;  %vm76_vm6 = vcmp.lt.s32.totalorder %v846_v11, 0  ;;  %v311_v0 = vshrl.u32 %v306_v4, 16  ;;  %v320_v2 = vadd.s32 %v319_v33, %v309_v28 }
  0xba   :  { %v396_v52 = vsel %vm395_vm4, %v394_v56, 0  ;;  %v179_v47 = vsel %vm177_vm5, %v178_v61, %v176_v57  ;;  %v268_v9 = vsel %vm262_vm14, %v265_v53, %v267_v27  ;;  %v391_v40 = vand.u32 8388607, %v384_v49 }
  0xbb   :  { %v1012_v14 = vadd.s32 %v298_v31, %v289_v16  ;;  %v180_v3 = vclz %v179_v47  ;;  %v1016_v10 = vadd.s32 %v314_v25, %v310_v34  ;;  %v321_v17 = vadd.s32 %v320_v2, %v311_v0 }
  0xbc   :  { %v398_v18 = vand.u32 31, %v396_v52  ;;  %v199_v62 = vsel %vm76_vm6, %v198_v63, %v174_v26  ;;  %vm1026_vm8 = vcmp.le.f32.partialorder %v74_v13, 0.7853982  ;;  %v168_v20 = vadd.s32 %v955_v36, %v963_v46 }
  0xbd   :  { %v730_v4 = vadd.s32 4294967294, %v180_v3  ;;  %vm324_vm7 = vc.u32 %v1012_v14, %v1016_v10  ;;  %v325_v19 = vadd.s32 1, %v321_v17  ;;  %v322_v23 = vmul.u32 %v878_v48, %v268_v9 }
  0xbe   :  { %v1022_v30 = vsub.s32 32, %v398_v18  ;;  %v392_v24 = vor.u32 8388608, %v391_v40  ;;  %v201_v34 = vsel %vm1026_vm8, 0, %v199_v62  ;;  %v1035_v26 = vshrl.u32 %v396_v52, 5 }
  0xbf   :  { %vm731_vm9 = vcmp.lt.s32.totalorder %v730_v4, 0  ;;  %v326_v25 = vsel %vm324_vm7, %v325_v19, %v321_v17  ;;  %v401_v48 = vshll.u32 %v782_v37, %v398_v18  ;;  %v404_v46 = vshll.u32 %v783_v39, %v398_v18 }
  0xc0   :  { %v183_v59 = vsel %vm731_vm9, 0, %v730_v4  ;;  %v327_v38 = vadd.s32 %v326_v25, %v322_v23  ;;  %v402_v13 = vshrl.u32 %v783_v39, %v1022_v30  ;;  %v405_v42 = vshrl.u32 %v784_v41, %v1022_v30 }
  0xc1   :  { %v184_v44 = vsub.s32 32, %v183_v59  ;;  %v188_v36 = vsub.s32 4294967266, %v183_v59  ;;  %v408_v22 = vshrl.u32 %v785_v43, %v1022_v30  ;;  %v410_v51 = vshll.u32 %v785_v43, %v398_v18 }
  0xc2   :  { %v328_v50 = vadd.s32 536870912, %v327_v38  ;;  %v411_v53 = vshrl.u32 %v786_v45, %v1022_v30  ;;  %v185_v55 = vshll.u32 %v176_v57, %v183_v59  ;;  %v414_v58 = vshrl.u32 %v787_v54, %v1022_v30 }
  0xc3   :  { %v186_v32 = vshrl.u32 %v168_v20, %v184_v44  ;;  %v189_v56 = vadd.s32 127, %v188_v36  ;;  %v403_v33 = vor.u32 %v402_v13, %v401_v48  ;;  %v1052_v27 = vor.u32 %v405_v42, %v404_v46 }
  0xc4   :  { %v1050_v60 = vshrl.u32 %v328_v50, 30  ;;  %v407_v16 = vshll.u32 %v784_v41, %v398_v18  ;;  %v412_v63 = vor.u32 %v411_v53, %v410_v51  ;;  %v413_v31 = vshll.u32 %v786_v45, %v398_v18 }
  0xc5   :  { %v187_v28 = vor.u32 %v186_v32, %v185_v55  ;;  %v190_v61 = vshll.u32 %v189_v56, 23  ;;  %vm416_vm10 = vcmp.lt.s32.totalorder %v1035_v26, 1  ;;  %v1058_v47 = vshll.u32 %v392_v24, 8 }
  0xc6   :  { %v330_v0 = vshll.u32 %v1050_v60, 30  ;;  %v409_v57 = vor.u32 %v408_v22, %v407_v16  ;;  %v415_v52 = vor.u32 %v414_v58, %v413_v31  ;;  %v218_v9 = vadd.s32 3, %v201_v34 }
  0xc7   :  { %v191_v2 = vor.u32 4788187, %v190_v61  ;;  %vm419_vm11 = vcmp.lt.s32.totalorder %v1035_v26, 4  ;;  %v424_v3 = vsel %vm416_vm10, %v403_v33, %v1052_v27  ;;  %v194_v18 = vcvt.s32.f32 %v187_v28 }
  0xc8   :  { %v1060_v40 = vsub.s32 %v327_v38, %v330_v0  ;;  %vm418_vm12 = vcmp.lt.s32.totalorder %v1035_v26, 3  ;;  %v425_v62 = vsel %vm419_vm11, %v412_v63, 920167782  ;;  %vm417_vm14 = vcmp.lt.s32.totalorder %v1035_v26, 2 }
  0xc9   :  { %v192_v17 = vand.u32 2147483647, %v191_v2  ;;  %v426_v19 = vsel %vm418_vm12, %v409_v57, %v425_v62  ;;  %v428_v24 = vsel %vm416_vm10, %v1052_v27, %v409_v57  ;;  %v429_v34 = vsel %vm419_vm11, %v415_v52, 1326507024 }
  0xca   :  { %vm332_vm13 = vcmp.lt.s32.totalorder %v1060_v40, 0  ;;  %v333_v4 = vsub.s32 0, %v1060_v40  ;;  %v427_v23 = vsel %vm417_vm14, %v424_v3, %v426_v19  ;;  %v430_v59 = vsel %vm418_vm12, %v412_v63, %v429_v34 }
  0xcb   :  { %v195_v20 = vmul.f32 %v194_v18, %v192_v17  ;;  %v433_v38 = vand.u32 65535, %v1058_v47  ;;  %v434_v13 = vshrl.u32 %v1058_v47, 16  ;;  %v1086_v44 = vand.u32 3, %v218_v9 }
  0xcc   :  { %v334_v25 = vsel %vm332_vm13, %v333_v4, %v1060_v40  ;;  %v431_v48 = vsel %vm417_vm14, %v428_v24, %v430_v59  ;;  %v400_v46 = vshrl.u32 %v782_v37, %v1022_v30  ;;  %v457_v22 = vand.u32 65535, %v427_v23 }
  0xcd   :  { %v196_v42 = vxor.u32 2147483648, %v195_v20  ;;  %v335_v36 = vclz %v334_v25  ;;  %v435_v50 = vand.u32 65535, %v431_v48  ;;  %v458_v51 = vshrl.u32 %v427_v23, 16 }
  0xce   :  { %v323_v55 = vadd.s32 %v1016_v10, %v1012_v14  ;;  %v436_v56 = vshrl.u32 %v431_v48, 16  ;;  %v353_v16 = vsub.s32 4, %v1050_v60  ;;  %v1104_v30 = vsel %vm416_vm10, %v400_v46, %v403_v33 }
  0xcf   :  { %v197_v53 = vsel %vm76_vm6, %v196_v42, %v195_v20  ;;  %v733_v32 = vadd.s32 4294967294, %v335_v36  ;;  %v1106_v28 = vmul.u32 %v435_v50, %v434_v13  ;;  %v421_v14 = vsel %vm419_vm11, %v409_v57, 2102212464 }
  0xd0   :  { %v1099_v58 = vsel %vm1026_vm8, %v846_v11, %v197_v53  ;;  %v438_v10 = vmul.u32 %v436_v56, %v433_v38  ;;  %v437_v29 = vmul.u32 %v435_v50, %v433_v38  ;;  %v459_v31 = vmul.u32 %v457_v22, %v433_v38 }
  0xd1   :  { %v202_v61 = vmul.f32 %v1099_v58, %v1099_v58  ;;  %vm734_vm15 = vcmp.lt.s32.totalorder %v733_v32, 0  ;;  %v1112_v0 = vmul.u32 %v458_v51, %v433_v38  ;;  %v440_v33 = vmul.u32 %v436_v56, %v434_v13 }
  0xd2   :  { %v338_v63 = vsel %vm734_vm15, 0, %v733_v32  ;;  %v441_v17 = vshll.u32 %v438_v10, 16  ;;  %v443_v18 = vshll.u32 %v1106_v28, 16  ;;  %v1115_v62 = vmul.u32 %v457_v22, %v434_v13 }
  0xd3   :  { %v203_v2 = vmul.f32 -0.001358992, %v202_v61  ;;  %v210_v52 = vmul.f32 -0.00019511016, %v202_v61  ;;  %v339_v9 = vsub.s32 32, %v338_v63  ;;  %v343_v3 = vsub.s32 4294967266, %v338_v63 }
  0xd4   :  { %v340_v57 = vshll.u32 %v1060_v40, %v338_v63  ;;  %vm445_vm0 = vc.u32 %v437_v29, %v441_v17  ;;  %v447_v24 = vadd.s32 %v441_v17, %v437_v29  ;;  %v463_v34 = vshll.u32 %v1112_v0, 16 }
  0xd5   :  { %v204_v4 = vadd.f32 0.041655596, %v203_v2  ;;  %v211_v19 = vadd.f32 0.008332121, %v210_v52  ;;  %v341_v20 = vshrl.u32 %v323_v55, %v339_v9  ;;  %v344_v23 = vadd.s32 127, %v343_v3  ;;  %v1133_v2 = vpop.f32.mrf.mxu3 }
  0xd6   :  { %v442_v38 = vshrl.u32 %v438_v10, 16  ;;  %v446_v42 = vsel %vm445_vm0, 1, %v788_v1  ;;  %vm231_vm1 = vcmp.lt.s32.totalorder %v849_v12, 0  ;;  %vm449_vm2 = vc.u32 %v447_v24, %v443_v18 }
  0xd7   :  { %v205_v25 = vmul.f32 %v204_v4, %v202_v61  ;;  %v212_v59 = vmul.f32 %v211_v19, %v202_v61  ;;  %v342_v36 = vor.u32 %v341_v20, %v340_v57  ;;  %v345_v48 = vshll.u32 %v344_v23, 23 }
  0xd8   :  { %v448_v46 = vadd.s32 %v446_v42, %v440_v33  ;;  %v450_v40 = vsel %vm449_vm2, 1, %v788_v1  ;;  %v462_v53 = vmul.u32 %v458_v51, %v434_v13  ;;  %vm221_vm3 = vcmp.eq.s32.totalorder %v1086_v44, 0 }
  0xd9   :  { %v206_v50 = vadd.f32 -0.4999988, %v205_v25  ;;  %v213_v22 = vadd.f32 -0.16666654, %v212_v59  ;;  %vm224_vm4 = vcmp.eq.s32.totalorder %v1086_v44, 2  ;;  %v465_v10 = vshll.u32 %v1115_v62, 16 }
  0xda   :  { %vm1126_vm5 = vcmp.le.f32.partialorder %v229_v15, 0.7853982  ;;  %v346_v32 = vor.u32 4788187, %v345_v48  ;;  %v452_v56 = vadd.s32 %v450_v40, %v448_v46  ;;  %vm467_vm6 = vc.u32 %v459_v31, %v463_v34 }
  0xdb   :  { %v207_v63 = vmul.f32 %v206_v50, %v202_v61  ;;  %v214_v29 = vmul.f32 %v213_v22, %v202_v61  ;;  %vm220_vm7 = vcmp.lt.s32.totalorder %v1086_v44, 2  ;;  %v468_v13 = vsel %vm467_vm6, 1, %v788_v1 }
  0xdc   :  { %v469_v51 = vadd.s32 %v463_v34, %v459_v31  ;;  %vm217_vm8 = vweird.f32 %v846_v11  ;;  %v347_v15 = vand.u32 2147483647, %v346_v32  ;;  %v349_v52 = vcvt.s32.f32 %v342_v36 }
  0xdd   :  { %v453_v9 = vadd.s32 %v452_v56, %v442_v38  ;;  %v470_v33 = vadd.s32 %v468_v13, %v462_v53  ;;  %v208_v3 = vadd.f32 1.0, %v207_v63  ;;  %v215_v17 = vadd.f32 1.0, %v214_v29 }
  0xde   :  { %vm694_vm9 = vcmp.ge.f32.partialorder %v837_v7, 0.0  ;;  %v422_v61 = vsel %vm418_vm12, %v1052_v27, %v421_v14  ;;  %vm471_vm10 = vc.u32 %v469_v51, %v465_v10  ;;  %v350_v18 = vmul.f32 %v349_v52, %v347_v15 }
  0xdf   :  { %v444_v31 = vshrl.u32 %v1106_v28, 16  ;;  %v472_v4 = vsel %vm471_vm10, 1, %v788_v1  ;;  %v67_v19 = vmul.f32 %v830_v5, %v1133_v2  ;;  %v216_v57 = vmul.f32 %v215_v17, %v1099_v58 }
  0xe0   :  { %v225_v20 = vxor.u32 2147483648, %v208_v3  ;;  %v464_v23 = vshrl.u32 %v1112_v0, 16  ;;  %v474_v24 = vadd.s32 %v472_v4, %v470_v33  ;;  %vm702_vm11 = vcmask 523264  }
  0xe1   :  { %v351_v34 = vxor.u32 2147483648, %v350_v18  ;;  %v1146_v25 = vadd.s32 %v453_v9, %v444_v31  ;;  %v1149_v27 = vadd.f32 %v835_v6, %v67_v19  ;;  %v222_v14 = vxor.u32 2147483648, %v216_v57 }
  0xe2   :  { %v354_v5 = vsel %vm231_vm1, %v353_v16, %v1050_v60  ;;  %v466_v58 = vshrl.u32 %v1115_v62, 16  ;;  %v475_v28 = vadd.s32 %v474_v24, %v464_v23  ;;  %v423_v59 = vsel %vm417_vm14, %v1104_v30, %v422_v61 }
  0xe3   :  { %v352_v0 = vsel %vm231_vm1, %v351_v34, %v350_v18  ;;  %v1162_v38 = vadd.s32 %v469_v51, %v465_v10  ;;  %v542_v6 = vand.u32 2139095040, %v1149_v27  ;;  %v223_v42 = vsel %vm221_vm3, %v208_v3, %v222_v14 }
  0xe4   :  { %v226_v60 = vsel %vm224_vm4, %v225_v20, %v216_v57  ;;  %v355_v16 = vsel %vm1126_vm5, %v849_v12, %v352_v0  ;;  %v476_v62 = vadd.s32 %v475_v28, %v466_v58  ;;  %v356_v46 = vsel %vm1126_vm5, 0, %v354_v5 }
  0xe5   :  { %v227_v36 = vsel %vm220_vm7, %v223_v42, %v226_v60  ;;  %v357_v26 = vmul.f32 %v355_v16, %v355_v16  ;;  %vm479_vm12 = vc.u32 %v1146_v25, %v1162_v38  ;;  %v543_v30 = vshrl.u32 %v542_v6, 23 }
  0xe6   :  { %v228_v48 = vsel %vm217_vm8, nan, %v227_v36  ;;  %v477_v50 = vmul.u32 %v1058_v47, %v423_v59  ;;  %v480_v22 = vadd.s32 1, %v476_v62  ;;  %v373_v13 = vadd.s32 3, %v356_v46 }
  0xe7   :  { %v698_v40 = vsel %vm694_vm9, %v228_v48, 0.0  ;;  %v358_v53 = vmul.f32 -0.001358992, %v357_v26  ;;  %v365_v44 = vmul.f32 -0.00019511016, %v357_v26  ;;  %v738_v32 = vadd.s32 4294967169, %v543_v30 }
  0xe8   :  { %703 = vst.msk [vmem:[#allocation2] sm:$0xff] %vm702_vm11, %v698_v40  ;;  %v481_v56 = vsel %vm479_vm12, %v480_v22, %v476_v62  ;;  %v539_v55 = vand.u32 2147483647, %v1149_v27  ;;  %v374_v3 = vand.u32 3, %v373_v13  ;;  %vm372_vm14 = vweird.f32 %v849_v12 }
  0xe9   :  { %v359_v10 = vadd.f32 0.041655596, %v358_v53  ;;  %v366_v63 = vadd.f32 0.008332121, %v365_v44  ;;  %v482_v29 = vadd.s32 %v481_v56, %v477_v50  ;;  %v549_v11 = vadd.s32 1, %v738_v32 }
  0xea   :  { %v546_v17 = vand.u32 8388607, %v539_v55  ;;  %vm695_vm15 = vcmp.ge.f32.partialorder %v839_v8, 0.0  ;;  %vm375_vm0 = vcmp.lt.s32.totalorder %v374_v3, 2  ;;  %vm376_vm1 = vcmp.eq.s32.totalorder %v374_v3, 0 }
  0xeb   :  { %v360_v51 = vmul.f32 %v359_v10, %v357_v26  ;;  %v367_v15 = vmul.f32 %v366_v63, %v357_v26  ;;  %v483_v47 = vadd.s32 536870912, %v482_v29  ;;  %vm550_vm13 = vcmp.gt.s32.totalorder %v549_v11, 0 }
  0xec   :  { %v551_v52 = vsel %vm550_vm13, %v549_v11, 0  ;;  %vm379_vm2 = vcmp.eq.s32.totalorder %v374_v3, 2  ;;  %v547_v24 = vor.u32 8388608, %v546_v17  ;;  %vm386_vm9 = vcmp.lt.s32.totalorder %v870_v35, 0 }
  0xed   :  { %v361_v7 = vadd.f32 -0.4999988, %v360_v51  ;;  %v368_v9 = vadd.f32 -0.16666654, %v367_v15  ;;  %v1185_v33 = vshrl.u32 %v483_v47, 30  ;;  %v553_v61 = vand.u32 31, %v551_v52 }
  0xee   :  { %v1194_v58 = vshrl.u32 %v551_v52, 5  ;;  %v1226_v63 = vshll.u32 %v547_v24, 8  ;;  %vm1254_vm10 = vcmp.le.f32.partialorder %v384_v49, 0.7853982 }
  0xef   :  { %v362_v18 = vmul.f32 %v361_v7, %v357_v26  ;;  %v369_v31 = vmul.f32 %v368_v9, %v357_v26  ;;  %v485_v4 = vshll.u32 %v1185_v33, 30  ;;  %v1190_v19 = vsub.s32 32, %v553_v61 }
  0xf0   :  { %v556_v28 = vshll.u32 %v782_v37, %v553_v61  ;;  %v559_v60 = vshll.u32 %v783_v39, %v553_v61  ;;  %v562_v26 = vshll.u32 %v784_v41, %v553_v61  ;;  %v565_v46 = vshll.u32 %v785_v43, %v553_v61 }
  0xf1   :  { %v363_v57 = vadd.f32 1.0, %v362_v18  ;;  %v370_v20 = vadd.f32 1.0, %v369_v31  ;;  %v486_v23 = vsub.s32 %v482_v29, %v485_v4  ;;  %v557_v0 = vshrl.u32 %v783_v39, %v1190_v19 }
  0xf2   :  { %v560_v59 = vshrl.u32 %v784_v41, %v1190_v19  ;;  %v566_v30 = vshrl.u32 %v786_v45, %v1190_v19  ;;  %v568_v50 = vshll.u32 %v786_v45, %v553_v61  ;;  %v569_v22 = vshrl.u32 %v787_v54, %v1190_v19 }
  0xf3   :  { %v371_v34 = vmul.f32 %v370_v20, %v355_v16  ;;  %v380_v14 = vxor.u32 2147483648, %v363_v57  ;;  %vm487_vm3 = vcmp.lt.s32.totalorder %v486_v23, 0  ;;  %v488_v5 = vsub.s32 0, %v486_v23 }
  0xf4   :  { %v563_v16 = vshrl.u32 %v785_v43, %v1190_v19  ;;  %v1213_v53 = vor.u32 %v557_v0, %v556_v28  ;;  %v1215_v44 = vor.u32 %v560_v59, %v559_v60  ;;  %v567_v56 = vor.u32 %v566_v30, %v565_v46 }
  0xf5   :  { %v377_v6 = vxor.u32 2147483648, %v371_v34  ;;  %v489_v42 = vsel %vm487_vm3, %v488_v5, %v486_v23  ;;  %v381_v62 = vsel %vm379_vm2, %v380_v14, %v371_v34  ;;  %v570_v10 = vor.u32 %v569_v22, %v568_v50 }
  0xf6   :  { %v490_v36 = vclz %v489_v42  ;;  %v564_v32 = vor.u32 %v563_v16, %v562_v26  ;;  %v478_v45 = vadd.s32 %v1162_v38, %v1146_v25  ;;  %vm571_vm5 = vcmp.lt.s32.totalorder %v1194_v58, 1 }
  0xf7   :  { %v378_v48 = vsel %vm376_vm1, %v363_v57, %v377_v6  ;;  %vm572_vm6 = vcmp.lt.s32.totalorder %v1194_v58, 2  ;;  %vm574_vm7 = vcmp.lt.s32.totalorder %v1194_v58, 4  ;;  %v579_v8 = vsel %vm571_vm5, %v1213_v53, %v1215_v44 }
  0xf8   :  { %v382_v39 = vsel %vm375_vm0, %v378_v48, %v381_v62  ;;  %v736_v40 = vadd.s32 4294967294, %v490_v36  ;;  %vm573_vm8 = vcmp.lt.s32.totalorder %v1194_v58, 3  ;;  %v580_v25 = vsel %vm574_vm7, %v567_v56, 920167782 }
  0xf9   :  { %v383_v41 = vsel %vm372_vm14, nan, %v382_v39  ;;  %v583_v38 = vsel %vm571_vm5, %v1215_v44, %v564_v32  ;;  %v584_v11 = vsel %vm574_vm7, %v570_v10, 1326507024  ;;  %v581_v47 = vsel %vm573_vm8, %v564_v32, %v580_v25 }
  0xfa   :  { %v699_v43 = vsel %vm695_vm15, %v383_v41, 0.0  ;;  %vm737_vm4 = vcmp.lt.s32.totalorder %v736_v40, 0  ;;  %v582_v52 = vsel %vm572_vm6, %v579_v8, %v581_v47  ;;  %v585_v7 = vsel %vm573_vm8, %v567_v56, %v584_v11 }
  0xfb   :  { %704 = vst.msk [vmem:[#allocation2 + $0x8] sm:$0xff] %vm702_vm11, %v699_v43  ;;  %v493_v54 = vsel %vm737_vm4, 0, %v736_v40  ;;  %v588_v9 = vand.u32 65535, %v1226_v63  ;;  %v586_v61 = vsel %vm572_vm6, %v583_v38, %v585_v7  ;;  %v612_v18 = vand.u32 65535, %v582_v52 }
  0xfc   :  { %v494_v12 = vsub.s32 32, %v493_v54  ;;  %v498_v29 = vsub.s32 4294967266, %v493_v54  ;;  %v495_v13 = vshll.u32 %v486_v23, %v493_v54  ;;  %v589_v31 = vshrl.u32 %v1226_v63, 16 }
  0xfd   :  { %v590_v4 = vand.u32 65535, %v586_v61  ;;  %v591_v57 = vshrl.u32 %v586_v61, 16  ;;  %v613_v20 = vshrl.u32 %v582_v52, 16  ;;  %v508_v59 = vsub.s32 4, %v1185_v33 }
  0xfe   :  { %v496_v51 = vshrl.u32 %v478_v45, %v494_v12  ;;  %v499_v15 = vadd.s32 127, %v498_v29  ;;  %v616_v5 = vmul.u32 %v612_v18, %v589_v31  ;;  %v555_v42 = vshrl.u32 %v782_v37, %v1190_v19 }
  0xff   :  { %v593_v34 = vmul.u32 %v591_v57, %v588_v9  ;;  %v594_v14 = vmul.u32 %v590_v4, %v589_v31  ;;  %v615_v6 = vmul.u32 %v613_v20, %v588_v9  ;;  %v592_v60 = vmul.u32 %v590_v4, %v588_v9 }
 0x100   :  { %v497_v3 = vor.u32 %v496_v51, %v495_v13  ;;  %v500_v17 = vshll.u32 %v499_v15, 23  ;;  %v614_v62 = vmul.u32 %v612_v18, %v588_v9  ;;  %v595_v26 = vmul.u32 %v591_v57, %v589_v31 }
 0x101   :  { %v596_v16 = vshll.u32 %v593_v34, 16  ;;  %v617_v49 = vmul.u32 %v613_v20, %v589_v31  ;;  %v618_v30 = vshll.u32 %v615_v6, 16  ;;  %v598_v48 = vshll.u32 %v594_v14, 16 }
 0x102   :  { %v501_v23 = vor.u32 4788187, %v500_v17  ;;  %v504_v0 = vcvt.s32.f32 %v497_v3  ;;  %v620_v50 = vshll.u32 %v616_v5, 16  ;;  %v576_v41 = vsel %vm574_vm7, %v564_v32, 2102212464 }
 0x103   :  { %vm600_vm12 = vc.u32 %v592_v60, %v596_v16  ;;  %v602_v46 = vadd.s32 %v596_v16, %v592_v60  ;;  %vm622_vm13 = vc.u32 %v614_v62, %v618_v30  ;;  %v624_v40 = vadd.s32 %v618_v30, %v614_v62 }
 0x104   :  { %v502_v28 = vand.u32 2147483647, %v501_v23  ;;  %v601_v39 = vsel %vm600_vm12, 1, %v788_v1  ;;  %v623_v19 = vsel %vm622_vm13, 1, %v788_v1  ;;  %v597_v54 = vshrl.u32 %v593_v34, 16 }
 0x105   :  { %v603_v37 = vadd.s32 %v601_v39, %v595_v26  ;;  %vm604_vm14 = vc.u32 %v602_v46, %v598_v48  ;;  %v625_v43 = vadd.s32 %v623_v19, %v617_v49  ;;  %vm626_vm15 = vc.u32 %v624_v40, %v620_v50 }
 0x106   :  { %v505_v36 = vmul.f32 %v504_v0, %v502_v28  ;;  %v605_v10 = vsel %vm604_vm14, 1, %v788_v1  ;;  %v627_v29 = vsel %vm626_vm15, 1, %v788_v1  ;;  %v619_v8 = vshrl.u32 %v615_v6, 16 }
 0x107   :  { %v607_v12 = vadd.s32 %v605_v10, %v603_v37  ;;  %v629_v25 = vadd.s32 %v627_v29, %v625_v43  ;;  %v575_v38 = vsel %vm571_vm5, %v555_v42, %v1213_v53  ;;  %v577_v11 = vsel %vm573_vm8, %v1215_v44, %v576_v41 }
 0x108   :  { %v506_v22 = vxor.u32 2147483648, %v505_v36  ;;  %v599_v13 = vshrl.u32 %v594_v14, 16  ;;  %v621_v52 = vshrl.u32 %v616_v5, 16  ;;  %v509_v1 = vsel %vm386_vm9, %v508_v59, %v1185_v33 }
 0x109   :  { %v608_v51 = vadd.s32 %v607_v12, %v597_v54  ;;  %v630_v7 = vadd.s32 %v629_v25, %v619_v8  ;;  %v628_v3 = vadd.s32 %v624_v40, %v620_v50  ;;  %v578_v53 = vsel %vm572_vm6, %v575_v38, %v577_v11 }
 0x10a   :  { %v507_v56 = vsel %vm386_vm9, %v506_v22, %v505_v36  ;;  %v511_v44 = vsel %vm1254_vm10, 0, %v509_v1  ;;  %v632_v20 = vmul.u32 %v1226_v63, %v578_v53  ;;  %vm527_vm4 = vweird.f32 %v870_v35 }
 0x10b   :  { %v510_v45 = vsel %vm1254_vm10, %v870_v35, %v507_v56  ;;  %v609_v9 = vadd.s32 %v608_v51, %v599_v13  ;;  %v631_v18 = vadd.s32 %v630_v7, %v621_v52  ;;  %v528_v14 = vadd.s32 3, %v511_v44 }
 0x10c   :  { %v512_v32 = vmul.f32 %v510_v45, %v510_v45  ;;  %vm696_vm6 = vcmp.ge.f32.partialorder %v857_v21, 0.0  ;;  %vm541_vm8 = vcmp.lt.s32.totalorder %v1149_v27, 0  ;;  %vm540_vm9 = vcmp.le.f32.partialorder %v539_v55, 0.7853982 }
 0x10d   :  { %vm634_vm0 = vc.u32 %v609_v9, %v628_v3  ;;  %v635_v57 = vadd.s32 1, %v631_v18  ;;  %v529_v42 = vand.u32 3, %v528_v14  ;;  %v633_v37 = vadd.s32 %v628_v3, %v609_v9 }
 0x10e   :  { %v513_v15 = vmul.f32 -0.001358992, %v512_v32  ;;  %v520_v47 = vmul.f32 -0.00019511016, %v512_v32  ;;  %vm682_vm14 = vweird.f32 %v1149_v27  ;;  %vm697_vm15 = vcmp.ge.f32.partialorder %v1133_v2, 0.0 }
 0x10f   :  { %v636_v33 = vsel %vm634_vm0, %v635_v57, %v631_v18  ;;  %vm531_vm1 = vcmp.eq.s32.totalorder %v529_v42, 0  ;;  %vm534_vm2 = vcmp.eq.s32.totalorder %v529_v42, 2  ;;  %vm530_vm3 = vcmp.lt.s32.totalorder %v529_v42, 2 }
 0x110   :  { %v514_v17 = vadd.f32 0.041655596, %v513_v15  ;;  %v521_v61 = vadd.f32 0.008332121, %v520_v47  ;;  %v637_v5 = vadd.s32 %v636_v33, %v632_v20 }
 0x112   :  { %v515_v31 = vmul.f32 %v514_v17, %v512_v32  ;;  %v522_v4 = vmul.f32 %v521_v61, %v512_v32  ;;  %v638_v59 = vadd.s32 536870912, %v637_v5 }
 0x114   :  { %v516_v23 = vadd.f32 -0.4999988, %v515_v31  ;;  %v523_v34 = vadd.f32 -0.16666654, %v522_v4  ;;  %v639_v60 = vshrl.u32 %v638_v59, 30 }
 0x116   :  { %v517_v28 = vmul.f32 %v516_v23, %v512_v32  ;;  %v524_v0 = vmul.f32 %v523_v34, %v512_v32  ;;  %v640_v62 = vshll.u32 %v639_v60, 30  ;;  %v663_v38 = vsub.s32 4, %v639_v60 }
 0x118   :  { %v518_v58 = vadd.f32 1.0, %v517_v28  ;;  %v525_v6 = vadd.f32 1.0, %v524_v0  ;;  %v641_v26 = vsub.s32 %v637_v5, %v640_v62  ;;  %v664_v47 = vsel %vm541_vm8, %v663_v38, %v639_v60 }
 0x119   :  { %v666_v1 = vsel %vm540_vm9, 0, %v664_v47 }
 0x11a   :  { %v526_v16 = vmul.f32 %v525_v6, %v510_v45  ;;  %v535_v24 = vxor.u32 2147483648, %v518_v58  ;;  %vm642_vm5 = vcmp.lt.s32.totalorder %v641_v26, 0  ;;  %v643_v48 = vsub.s32 0, %v641_v26 }
 0x11b   :  { %v683_v53 = vadd.s32 3, %v666_v1 }
 0x11c   :  { %v532_v36 = vxor.u32 2147483648, %v526_v16  ;;  %v536_v49 = vsel %vm534_vm2, %v535_v24, %v526_v16  ;;  %v644_v22 = vsel %vm642_vm5, %v643_v48, %v641_v26 }
 0x11d   :  { %v645_v39 = vclz %v644_v22  ;;  %v684_v4 = vand.u32 3, %v683_v53 }
 0x11e   :  { %v533_v63 = vsel %vm531_vm1, %v518_v58, %v532_v36 }
 0x11f   :  { %v537_v30 = vsel %vm530_vm3, %v533_v63, %v536_v49  ;;  %v739_v40 = vadd.s32 4294967294, %v645_v39  ;;  %vm686_vm10 = vcmp.eq.s32.totalorder %v684_v4, 0  ;;  %vm689_vm12 = vcmp.eq.s32.totalorder %v684_v4, 2 }
 0x120   :  { %v538_v46 = vsel %vm527_vm4, nan, %v537_v30  ;;  %vm685_vm13 = vcmp.lt.s32.totalorder %v684_v4, 2 }
 0x121   :  { %v700_v50 = vsel %vm696_vm6, %v538_v46, 0.0  ;;  %vm740_vm7 = vcmp.lt.s32.totalorder %v739_v40, 0 }
 0x122   :  { %705 = vst.msk [vmem:[#allocation2 + $0x10] sm:$0xff] %vm702_vm11, %v700_v50  ;;  %v648_v41 = vsel %vm740_vm7, 0, %v739_v40 }
 0x123   :  { %v649_v19 = vsub.s32 32, %v648_v41  ;;  %v653_v56 = vsub.s32 4294967266, %v648_v41  ;;  %v650_v10 = vshll.u32 %v641_v26, %v648_v41 }
 0x125   :  { %v651_v43 = vshrl.u32 %v633_v37, %v649_v19  ;;  %v654_v35 = vadd.s32 127, %v653_v56 }
 0x127   :  { %v652_v45 = vor.u32 %v651_v43, %v650_v10  ;;  %v655_v54 = vshll.u32 %v654_v35, 23 }
 0x129   :  { %v656_v12 = vor.u32 4788187, %v655_v54  ;;  %v659_v32 = vcvt.s32.f32 %v652_v45 }
 0x12b   :  { %v657_v29 = vand.u32 2147483647, %v656_v12 }
 0x12d   :  { %v660_v21 = vmul.f32 %v659_v32, %v657_v29 }
 0x12f   :  { %v661_v8 = vxor.u32 2147483648, %v660_v21 }
 0x131   :  { %v662_v25 = vsel %vm541_vm8, %v661_v8, %v660_v21 }
 0x132   :  { %v665_v11 = vsel %vm540_vm9, %v1149_v27, %v662_v25 }
 0x133   :  { %v667_v13 = vmul.f32 %v665_v11, %v665_v11 }
 0x135   :  { %v668_v51 = vmul.f32 -0.001358992, %v667_v13  ;;  %v675_v15 = vmul.f32 -0.00019511016, %v667_v13 }
 0x137   :  { %v669_v52 = vadd.f32 0.041655596, %v668_v51  ;;  %v676_v7 = vadd.f32 0.008332121, %v675_v15 }
 0x139   :  { %v670_v9 = vmul.f32 %v669_v52, %v667_v13  ;;  %v677_v3 = vmul.f32 %v676_v7, %v667_v13 }
 0x13b   :  { %v671_v17 = vadd.f32 -0.4999988, %v670_v9  ;;  %v678_v61 = vadd.f32 -0.16666654, %v677_v3 }
 0x13d   :  { %v672_v18 = vmul.f32 %v671_v17, %v667_v13  ;;  %v679_v44 = vmul.f32 %v678_v61, %v667_v13 }
 0x13f   :  { %v673_v31 = vadd.f32 1.0, %v672_v18  ;;  %v680_v55 = vadd.f32 1.0, %v679_v44 }
 0x141   :  { %v681_v57 = vmul.f32 %v680_v55, %v665_v11  ;;  %v690_v20 = vxor.u32 2147483648, %v673_v31 }
 0x143   :  { %v687_v23 = vxor.u32 2147483648, %v681_v57  ;;  %v691_v33 = vsel %vm689_vm12, %v690_v20, %v681_v57 }
 0x145   :  { %v688_v34 = vsel %vm686_vm10, %v673_v31, %v687_v23 }
 0x146   :  { %v692_v14 = vsel %vm685_vm13, %v688_v34, %v691_v33 }
 0x147   :  { %v693_v5 = vsel %vm682_vm14, nan, %v692_v14 }
 0x148   :  { %v701_v28 = vsel %vm697_vm15, %v693_v5, 0.0 }
 0x149   :  { %706 = vst.msk [vmem:[#allocation2 + $0x18] sm:$0xff] %vm702_vm11, %v701_v28 }
 0x14a   :  { %719 = dma.vmem_to_hbm [thread:$0]  %s712_s1, 512, %s714_s27, [#allocation3], %s790_s28, %s790_s28, %s791_s29  }
 0x14b   :  { %780 = dma.done.wait [#allocation3], 512  }
 0x14c   :  { %781 = vsyncadd [#allocation3], 4294966784 }
 0x14d   :  { %724 = vsyncpa [#allocation3], 1 }

</bundles_post_ra>
